<compile_context>
chip_gen: v7x
topology: tpu7x:2x2x1
jax: 0.10.0
libtpu: 0.0.40
codegen_flags: <defaults>
</compile_context>

<pallas_src>
import math

import jax
import jax.numpy as jnp
from jax.experimental import pallas as pl
from jax.experimental.pallas import tpu as pltpu

_MiB = 1024 * 1024


# ---------------------------------------------------------------------------
# small static helpers
# ---------------------------------------------------------------------------
def _gauss3_weights(sigma):
    # torchvision GaussianBlur convention, kernel_size=3 (hard-coded 3 taps).
    taps = [math.exp(-0.5 * (t / sigma) ** 2) for t in (-1.0, 0.0, 1.0)]
    norm = sum(taps)
    return taps[1] / norm, taps[0] / norm            # (center, side)


def _padded_plane_bytes(H, W, itemsize=4, sublane=8, lane=128):
    """Bytes of one (H, W) f32 plane after (8, 128) tile padding."""
    hp = ((H + sublane - 1) // sublane) * sublane
    wp = ((W + lane - 1) // lane) * lane
    return hp * wp * itemsize


def _tpu_vmem_capacity_bytes():
    # TODO(synk): per-chip query; falls back to the smallest current part (v7x, 64 MiB/TC).
    try:
        info = pltpu.get_tpu_info()
        for attr in ("vmem_capacity_bytes", "vmem_bytes", "vmem_size_bytes"):
            v = getattr(info, attr, None)
            if v:
                return int(v)
    except Exception:
        pass
    return 64 * _MiB


def _vmem_budgets():
    """(fused-path gate bytes, scoped vmem_limit_bytes), generation-aware."""
    cap = _tpu_vmem_capacity_bytes()
    if cap >= 96 * _MiB:                 # v5e / v6e: 128 MiB physical VMEM
        fuse_budget = int(cap * 0.75)    # ~96 MiB gate
    else:                                # v7x: 64 MiB per TensorCore
        fuse_budget = int(cap * 0.65)    # ~41 MiB gate
    vmem_limit = max(min(int(cap * 0.875), cap - 12 * _MiB), 32 * _MiB)
    return fuse_budget, vmem_limit


def _pick_block_depth(D, H, W, target_bytes):
    """Depth-tile size: prefer a divisor of D near the target block size; otherwise
    accept a ragged (masked) last block instead of degrading to tiny tiles."""
    plane = _padded_plane_bytes(H, W)
    td = int(max(1, min(D, target_bytes // max(plane, 1))))
    for cand in range(td, max(td // 2, 1) - 1, -1):
        if D % cand == 0:
            return cand
    return td                            # ragged last block


def _pick_two_pass_depth(D, H, W, vmem_limit):
    plane = _padded_plane_bytes(H, W)
    target = (8 * _MiB) if vmem_limit >= 96 * _MiB else (4 * _MiB)
    # 4 double-buffered (TD,H,W) f32 blocks (p, x, bg, blurred) must fit comfortably.
    target = max(min(target, int(0.7 * vmem_limit) // 8), plane)
    return _pick_block_depth(D, H, W, target)


def _fused_vmem_bytes(D, H, W, TD):
    """VMEM footprint of the single-call path, with (8,128) tile padding included."""
    plane = _padded_plane_bytes(H, W)
    nD = -(-D // TD)
    slab = nD * TD * plane                           # VMEM-resident blurred volume
    accs = 2 * plane + 8 * 128 * 4                   # min/max planes + scale/bias tile
    blocks = 2 * 4 * TD * plane                      # double-buffered p, x, bg, out blocks
    return slab + accs + blocks


# ---------------------------------------------------------------------------
# in-kernel math on one whole (TD, H, W) block (no per-slice loop)
# ---------------------------------------------------------------------------
def _fuse_blur_block(p, x, bg, w_c, w_s):
    """fused = where(bg == 0, (p+1)*x, p+1); 3x3 separable Gaussian blur per depth
    slice with reflect padding.  All ops are full-block VPU/XLU ops."""
    TD, H, W = p.shape
    p1 = p + 1.0
    f = jnp.where(bg == 0.0, p1 * x, p1)

    # --- vertical (sublane / H) pass -----------------------------------------
    # nb[i] = f[i-1] + f[i+1] (cyclic); reflect fix as one additive correction:
    #   row 0   : needs 2*f[1]   but nb has f[H-1]+f[1]  -> add f[1]   - f[H-1]
    #   row H-1 : needs 2*f[H-2] but nb has f[H-2]+f[0]  -> add f[H-2] - f[0]
    row = jax.lax.broadcasted_iota(jnp.int32, (1, H, 1), 1)
    top, bot = row == 0, row == H - 1
    nb = pltpu.roll(f, 1, 1) + pltpu.roll(f, H - 1, 1)
    corr = jnp.where(top, f[:, 1:2, :] - f[:, H - 1:H, :],
                     jnp.where(bot, f[:, H - 2:H - 1, :] - f[:, 0:1, :], 0.0))
    t = w_c * f + w_s * (nb + corr)

    # --- horizontal (lane / W) pass ------------------------------------------
    col = jax.lax.broadcasted_iota(jnp.int32, (1, 1, W), 2)
    lft, rgt = col == 0, col == W - 1
    nb = pltpu.roll(t, 1, 2) + pltpu.roll(t, W - 1, 2)
    corr = jnp.where(lft, t[:, :, 1:2] - t[:, :, W - 1:W],
                     jnp.where(rgt, t[:, :, W - 2:W - 1] - t[:, :, 0:1], 0.0))
    return w_c * t + w_s * (nb + corr)


def _block_minmax(blur3d, d, TD, D, ragged):
    """Per-block elementwise (H, W) min/max over the depth axis, masking any padded
    rows of a ragged last block."""
    if ragged:
        depth = jax.lax.broadcasted_iota(jnp.int32, (TD, 1, 1), 0) + d * TD
        valid = depth < D
        bmin = jnp.where(valid, blur3d, jnp.inf).min(axis=0)
        bmax = jnp.where(valid, blur3d, -jnp.inf).max(axis=0)
    else:
        bmin = blur3d.min(axis=0)
        bmax = blur3d.max(axis=0)
    return bmin, bmax


# ---------------------------------------------------------------------------
# Pallas path 1: single pallas_call, blurred volume VMEM-resident (no HBM round-trip)
# ---------------------------------------------------------------------------
def _fused_call(p3, x3, bg, D, H, W, TD, w_c, w_s, eps, vmem_limit):
    nD = pl.cdiv(D, TD)
    ragged = (D % TD) != 0
    # NOTE: the phase/accumulator structure forces a sequential grid, so this path runs
    # on one TensorCore; large volumes take the two-pass path which is depth-parallel.

    def kernel(p_ref, x_ref, bg_ref, out_ref, blur_sc, min_sc, max_sc, sb_sc):
        ph = pl.program_id(0)          # phase 0: fuse+blur into VMEM, phase 1: normalize
        d = pl.program_id(1)

        @pl.when(ph == 0)
        def _():
            @pl.when(d == 0)
            def _():
                min_sc[...] = jnp.full((H, W), jnp.inf, jnp.float32)
                max_sc[...] = jnp.full((H, W), -jnp.inf, jnp.float32)

            blur3d = _fuse_blur_block(p_ref[...], x_ref[...], bg_ref[...], w_c, w_s)
            off = pl.multiple_of(d * TD, TD)
            blur_sc[pl.ds(off, TD)] = blur3d                    # one slab store / step

            bmin, bmax = _block_minmax(blur3d, d, TD, D, ragged)
            min_sc[...] = jnp.minimum(min_sc[...], bmin)        # one RMW / step
            max_sc[...] = jnp.maximum(max_sc[...], bmax)

            @pl.when(d == nD - 1)
            def _():
                mn = jnp.min(jnp.min(min_sc[...], axis=1, keepdims=True),
                             axis=0, keepdims=True)             # (1, 1)
                mx = jnp.max(jnp.max(max_sc[...], axis=1, keepdims=True),
                             axis=0, keepdims=True)
                scale = 2.0 / jnp.maximum(mx - mn, eps)
                sb_sc[0:1, 0:1] = scale
                sb_sc[1:2, 0:1] = -mn * scale - 1.0

        @pl.when(ph == 1)
        def _():
            off = pl.multiple_of(d * TD, TD)
            out_ref[...] = (blur_sc[pl.ds(off, TD)] * sb_sc[0:1, 0:1]
                            + sb_sc[1:2, 0:1])

    # phase-1 input block index stays at the last phase-0 block -> no redundant DMA.
    in_map = lambda ph, d: (d * (1 - ph) + (nD - 1) * ph, 0, 0)
    return pl.pallas_call(
        kernel,
        grid=(2, nD),
        in_specs=[
            pl.BlockSpec((TD, H, W), in_map),                   # p
            pl.BlockSpec((TD, H, W), in_map),                   # x
            pl.BlockSpec((TD, H, W), in_map),                   # onehot[0] (f32)
        ],
        out_specs=pl.BlockSpec((TD, H, W), lambda ph, d: (d * ph, 0, 0)),
        out_shape=jax.ShapeDtypeStruct((D, H, W), jnp.float32),
        scratch_shapes=[
            pltpu.VMEM((nD * TD, H, W), jnp.float32),           # blurred volume (VMEM)
            pltpu.VMEM((H, W), jnp.float32),                    # running elementwise min
            pltpu.VMEM((H, W), jnp.float32),                    # running elementwise max
            pltpu.VMEM((8, 128), jnp.float32),                  # scale / bias
        ],
        compiler_params=pltpu.CompilerParams(
            dimension_semantics=("arbitrary", "arbitrary"),
            vmem_limit_bytes=vmem_limit,
        ),
    )(p3, x3, bg)


# ---------------------------------------------------------------------------
# Pallas path 2: two-pass fallback for volumes that do not fit the VMEM budget
# (both passes are depth-parallel, so v7x shards them across its 2 TensorCores)
# ---------------------------------------------------------------------------
def _two_pass_call(p3, x3, bg, D, H, W, TD, w_c, w_s, eps, vmem_limit):
    nD = pl.cdiv(D, TD)
    ragged = (D % TD) != 0

    def pass1_kernel(p_ref, x_ref, bg_ref, blur_ref, mn_ref, mx_ref):
        d = pl.program_id(0)
        blur3d = _fuse_blur_block(p_ref[...], x_ref[...], bg_ref[...], w_c, w_s)
        blur_ref[...] = blur3d
        bmin, bmax = _block_minmax(blur3d, d, TD, D, ragged)
        mn_ref[0] = bmin
        mx_ref[0] = bmax

    blurred, mins, maxs = pl.pallas_call(
        pass1_kernel,
        grid=(nD,),
        in_specs=[
            pl.BlockSpec((TD, H, W), lambda d: (d, 0, 0)),
            pl.BlockSpec((TD, H, W), lambda d: (d, 0, 0)),
            pl.BlockSpec((TD, H, W), lambda d: (d, 0, 0)),
        ],
        out_specs=[
            pl.BlockSpec((TD, H, W), lambda d: (d, 0, 0)),
            pl.BlockSpec((1, H, W), lambda d: (d, 0, 0)),
            pl.BlockSpec((1, H, W), lambda d: (d, 0, 0)),
        ],
        out_shape=[
            jax.ShapeDtypeStruct((D, H, W), jnp.float32),
            jax.ShapeDtypeStruct((nD, H, W), jnp.float32),
            jax.ShapeDtypeStruct((nD, H, W), jnp.float32),
        ],
        compiler_params=pltpu.CompilerParams(
            dimension_semantics=("parallel",),
            vmem_limit_bytes=vmem_limit,
        ),
    )(p3, x3, bg)

    # tiny wrapper reduce over the per-block partials; scale/bias go to pass 2 via SMEM
    mn = jnp.min(mins)
    mx = jnp.max(maxs)
    scale = 2.0 / jnp.maximum(mx - mn, eps)
    sb = jnp.stack([scale, -mn * scale - 1.0]).astype(jnp.float32)     # (2,)

    def pass2_kernel(sb_ref, blur_ref, out_ref):
        out_ref[...] = blur_ref[...] * sb_ref[0] + sb_ref[1]

    return pl.pallas_call(
        pass2_kernel,
        grid=(nD,),
        in_specs=[
            pl.BlockSpec(memory_space=pltpu.MemorySpace.SMEM),
            pl.BlockSpec((TD, H, W), lambda d: (d, 0, 0)),
        ],
        out_specs=pl.BlockSpec((TD, H, W), lambda d: (d, 0, 0)),
        out_shape=jax.ShapeDtypeStruct((D, H, W), jnp.float32),
        compiler_params=pltpu.CompilerParams(
            dimension_semantics=("parallel",),
            vmem_limit_bytes=vmem_limit,
        ),
    )(sb, blurred)


# ---------------------------------------------------------------------------
# FuseSynth hot path: fuse -> blur -> min/max -> normalize
# ---------------------------------------------------------------------------
def fuse_blur_normalize_pallas(p, x, onehot, sigma, *, eps=1e-6, block_depth=None,
                               force_two_pass=False):
    """p, x: (1, D, H, W); onehot: (3, D, H, W). Returns (D, H, W) == final_out.squeeze()."""
    _, D, H, W = p.shape
    if H < 2 or W < 2:
        raise ValueError("reflect-padded 3x3 blur requires H >= 2 and W >= 2")
    # TODO(synk): if W % 128 != 0 but H % 128 == 0, the in-plane axes could be swapped
    # (the 3-tap blur is H/W symmetric) for lane-dense stores; not done here.

    p3 = p[0].astype(jnp.float32)                     # (D, H, W)
    x3 = x[0].astype(jnp.float32)                     # (D, H, W)
    bg = onehot[0].astype(jnp.float32)                # background channel, ==0 test in-kernel

    w_c, w_s = _gauss3_weights(sigma)
    fuse_budget, vmem_limit = _vmem_budgets()

    if block_depth is not None:
        td_fused = td_two = max(1, min(int(block_depth), D))
    else:
        td_fused = _pick_block_depth(D, H, W, 2 * _MiB)
        td_two = _pick_two_pass_depth(D, H, W, vmem_limit)

    use_fused = (not force_two_pass) and (_fused_vmem_bytes(D, H, W, td_fused) <= fuse_budget)
    if use_fused:
        return _fused_call(p3, x3, bg, D, H, W, td_fused, w_c, w_s, eps, vmem_limit)
    return _two_pass_call(p3, x3, bg, D, H, W, td_two, w_c, w_s, eps, vmem_limit)


def fuse_blur_normalize_reference(p, x, onehot, sigma, eps=1e-6):
    """Pure-JAX reference of the Pallas hot path (for validation)."""
    p1 = p[0].astype(jnp.float32) + 1.0
    fused = jnp.where(onehot[0] == 0, p1 * x[0].astype(jnp.float32), p1)
    w_c, w_s = _gauss3_weights(sigma)
    padh = jnp.pad(fused, ((0, 0), (1, 1), (0, 0)), mode="reflect")
    tmp = w_s * padh[:, :-2, :] + w_c * padh[:, 1:-1, :] + w_s * padh[:, 2:, :]
    padw = jnp.pad(tmp, ((0, 0), (0, 0), (1, 1)), mode="reflect")
    blur = w_s * padw[:, :, :-2] + w_c * padw[:, :, 1:-1] + w_s * padw[:, :, 2:]
    mn = jnp.min(blur)
    mx = jnp.max(blur)
    scale = 2.0 / jnp.maximum(mx - mn, eps)
    return blur * scale + (-mn * scale - 1.0)


# ---------------------------------------------------------------------------
# Plain-JAX glue: deterministic stand-ins for the stochastic synth sub-modules
# ---------------------------------------------------------------------------
def vessel_intensity_synth(vessel_labels, n_labels):
    """Deterministic stand-in for VesselIntensitySynth.forward -> (scaling, onehot)."""
    # TODO(synk): fov.RandomFlipTransform, random label pruning (randperm) and Uniform
    # intensity sampling are stochastic augs from an external library; deterministic
    # choices are used here instead.
    vl = vessel_labels[None].astype(jnp.float32)               # (1, D, H, W)
    shape = vl.shape
    scaling = jnp.ones(shape, jnp.float32)
    onehot = jnp.zeros((3,) + shape[1:], jnp.float32)
    mask = jnp.zeros(shape, jnp.float32)

    kept_ids = [i for i in range(1, n_labels + 1) if i % 2 == 1]   # "prune" even ids
    low_intensity, high_intensity = 0.25, 1.8   # Uniform(0,0.5) / Uniform(1.5,2.1)

    for j, lid in enumerate(kept_ids):
        m = vl[0] == float(lid)                                # (D, H, W)
        if j % 2 == 0:
            onehot = onehot.at[1].set(jnp.where(m, 1.0, onehot[1]))
            inten = low_intensity
        else:
            onehot = onehot.at[2].set(jnp.where(m, 1.0, onehot[2]))
            inten = high_intensity
        scaling = jnp.where(m[None], inten, scaling)
        mask = jnp.where(m[None], 1.0, mask)
    onehot = onehot.at[0].set(jnp.where(mask[0] == 0.0, 1.0, 0.0))
    return scaling, onehot


def parenchyma_synth(shape, key):
    """Deterministic stand-in for ParenchymaSynth1.forward -> (1, D, H, W)."""
    # TODO(synk): labels.RandomSmoothLabelMap, intensity.RandomSlicewiseMulFieldTransform
    # and labels.SmoothBernoulliDiskTransform come from an external synth library with no
    # clean Pallas equivalent; a deterministic smooth base + slicewise field is used.
    _, D, H, W = shape
    zz, yy, xx = jnp.meshgrid(
        jnp.arange(D, dtype=jnp.float32),
        jnp.arange(H, dtype=jnp.float32),
        jnp.arange(W, dtype=jnp.float32),
        indexing="ij",
    )
    base = jnp.floor(1.5 + jnp.sin(zz / 3.0) + jnp.cos(yy / 5.0) + jnp.sin(xx / 7.0)) + 1.0
    slicewise = 0.8 + 0.4 * jnp.sin(jnp.arange(D, dtype=jnp.float32) / 2.0)[:, None, None]
    p = (base * slicewise)[None].astype(jnp.float32)               # (1, D, H, W)
    p = p + 0.1 * jax.random.normal(key, p.shape, jnp.float32)     # inject_noise(p, 0.1)
    p = p - (jnp.min(p) + 1.0)                                     # p -= p.min() + 1
    return p


def fuse_synth_forward(vessel_labels, key, n_labels, sigma=0.5):
    """JAX/Pallas equivalent of FuseSynth.forward(vessel_labels)."""
    x, y = vessel_intensity_synth(vessel_labels, n_labels)         # (1,D,H,W), (3,D,H,W)
    p = parenchyma_synth(x.shape, key)                             # (1,D,H,W)
    final = fuse_blur_normalize_pallas(p, x, y, sigma)             # (D,H,W) == .squeeze()
    return final, y


# ---------------------------------------------------------------------------
if __name__ == "__main__":
    key = jax.random.PRNGKey(0)
    D, H, W = 4, 16, 128
    n_labels = 6

    k_lab, k_sparse, k_par = jax.random.split(key, 3)
    raw = jax.random.randint(k_lab, (D, H, W), 1, n_labels + 1)
    sparse = jax.random.uniform(k_sparse, (D, H, W)) < 0.2
    vessel_labels = jnp.where(sparse, raw, 0).astype(jnp.int32)

    final_out, y = fuse_synth_forward(vessel_labels, k_par, n_labels, sigma=0.5)
    jax.block_until_ready((final_out, y))

    assert final_out.shape == (D, H, W)
    assert y.shape == (3, D, H, W)
    assert bool(jnp.isfinite(final_out).all())
    assert float(jnp.min(final_out)) >= -1.0 - 1e-4
    assert float(jnp.max(final_out)) <= 1.0 + 1e-4

    # cross-check every Pallas code path against a pure-JAX reference:
    #   fused (auto), fused multi-block, fused ragged, two-pass, two-pass ragged
    x_s, y_s = vessel_intensity_synth(vessel_labels, n_labels)
    p_s = parenchyma_synth(x_s.shape, k_par)
    ref = fuse_blur_normalize_reference(p_s, x_s, y_s, 0.5)

    outs = [
        final_out,
        fuse_blur_normalize_pallas(p_s, x_s, y_s, 0.5, block_depth=1),
        fuse_blur_normalize_pallas(p_s, x_s, y_s, 0.5, block_depth=3),
        fuse_blur_normalize_pallas(p_s, x_s, y_s, 0.5, block_depth=2, force_two_pass=True),
        fuse_blur_normalize_pallas(p_s, x_s, y_s, 0.5, block_depth=3, force_two_pass=True),
    ]
    jax.block_until_ready((ref, outs))

    for out in outs:
        err = float(jnp.max(jnp.abs(out - ref)))
        assert err < 1e-4, err

    print("KERNEL_OK")
</pallas_src>

<mosaic_0001>
module attributes {stable_mosaic.version = 11 : i64} {
  func.func @kernel(%arg0: i32, %arg1: i32, %arg2: memref<4x16x128xf32, #tpu.memory_space<vmem>>, %arg3: memref<4x16x128xf32, #tpu.memory_space<vmem>>, %arg4: memref<4x16x128xf32, #tpu.memory_space<vmem>>, %arg5: memref<4x16x128xf32, #tpu.memory_space<vmem>>, %arg6: memref<4x16x128xf32, #tpu.memory_space<vmem>>, %arg7: memref<16x128xf32, #tpu.memory_space<vmem>>, %arg8: memref<16x128xf32, #tpu.memory_space<vmem>>, %arg9: memref<8x128xf32, #tpu.memory_space<vmem>>) attributes {dimension_semantics = [#tpu.dimension_semantics<arbitrary>, #tpu.dimension_semantics<arbitrary>], iteration_bounds = array<i64: 2, 1>, scalar_prefetch = 0 : i64, scratch_operands = 4 : i64, tpu.core_type = #tpu.core_type<tc>, window_params = [{transform_indices = @transform_0, window_bounds = array<i64: 4, 16, 128>}, {transform_indices = @transform_1, window_bounds = array<i64: 4, 16, 128>}, {transform_indices = @transform_2, window_bounds = array<i64: 4, 16, 128>}, {transform_indices = @transform_3, window_bounds = array<i64: 4, 16, 128>}]} {
    %c0_i32 = arith.constant 0 : i32
    %0 = arith.cmpi eq, %arg0, %c0_i32 : i32
    %1 = arith.extui %0 : i1 to i32
    %c0_i32_0 = arith.constant 0 : i32
    %2 = arith.cmpi ne, %1, %c0_i32_0 : i32
    scf.if %2 {
      %c0_i32_2 = arith.constant 0 : i32
      %6 = arith.cmpi eq, %arg1, %c0_i32_2 : i32
      %7 = arith.extui %6 : i1 to i32
      %c0_i32_3 = arith.constant 0 : i32
      %8 = arith.cmpi ne, %7, %c0_i32_3 : i32
      scf.if %8 {
        %cst_39 = arith.constant 0x7F800000 : f32
        %95 = vector.broadcast %cst_39 : f32 to vector<16x128xf32>
        %c0_40 = arith.constant 0 : index
        %c0_41 = arith.constant 0 : index
        %96 = vector.load %arg7[%c0_40, %c0_41] : memref<16x128xf32, #tpu.memory_space<vmem>>, vector<16x128xf32>
        tpu.vector_store %arg7[%c0_40, %c0_41], %95 {strides = array<i32>} : memref<16x128xf32, #tpu.memory_space<vmem>>, vector<16x128xf32>,
        %cst_42 = arith.constant 0xFF800000 : f32
        %97 = vector.broadcast %cst_42 : f32 to vector<16x128xf32>
        %c0_43 = arith.constant 0 : index
        %c0_44 = arith.constant 0 : index
        %98 = vector.load %arg8[%c0_43, %c0_44] : memref<16x128xf32, #tpu.memory_space<vmem>>, vector<16x128xf32>
        tpu.vector_store %arg8[%c0_43, %c0_44], %97 {strides = array<i32>} : memref<16x128xf32, #tpu.memory_space<vmem>>, vector<16x128xf32>,
      } else {
      }
      %c0 = arith.constant 0 : index
      %c0_4 = arith.constant 0 : index
      %c0_5 = arith.constant 0 : index
      %9 = vector.load %arg2[%c0, %c0_4, %c0_5] : memref<4x16x128xf32, #tpu.memory_space<vmem>>, vector<4x16x128xf32>
      %c0_6 = arith.constant 0 : index
      %c0_7 = arith.constant 0 : index
      %c0_8 = arith.constant 0 : index
      %10 = vector.load %arg3[%c0_6, %c0_7, %c0_8] : memref<4x16x128xf32, #tpu.memory_space<vmem>>, vector<4x16x128xf32>
      %c0_9 = arith.constant 0 : index
      %c0_10 = arith.constant 0 : index
      %c0_11 = arith.constant 0 : index
      %11 = vector.load %arg4[%c0_9, %c0_10, %c0_11] : memref<4x16x128xf32, #tpu.memory_space<vmem>>, vector<4x16x128xf32>
      %cst = arith.constant 1.000000e+00 : f32
      %12 = vector.broadcast %cst : f32 to vector<4x16x128xf32>
      %13 = arith.addf %9, %12 : vector<4x16x128xf32>
      %cst_12 = arith.constant 0.000000e+00 : f32
      %14 = vector.broadcast %cst_12 : f32 to vector<4x16x128xf32>
      %15 = arith.cmpf oeq, %11, %14 : vector<4x16x128xf32>
      %16 = arith.mulf %13, %10 : vector<4x16x128xf32>
      %17 = arith.select %15, %16, %13 : vector<4x16x128xi1>, vector<4x16x128xf32>
      %18 = tpu.iota {dimensions = array<i32: 1>} : vector<1x16x1xi32>
      %c0_i32_13 = arith.constant 0 : i32
      %19 = vector.broadcast %c0_i32_13 : i32 to vector<1x16x1xi32>
      %20 = arith.cmpi eq, %18, %19 : vector<1x16x1xi32>
      %c15_i32 = arith.constant 15 : i32
      %21 = vector.broadcast %c15_i32 : i32 to vector<1x16x1xi32>
      %22 = arith.cmpi eq, %18, %21 : vector<1x16x1xi32>
      %c1_i32_14 = arith.constant 1 : i32
      %23 = tpu.dynamic_rotate %17 by %c1_i32_14 dim 1 : vector<4x16x128xf32>, i32 -> vector<4x16x128xf32>
      %c15_i32_15 = arith.constant 15 : i32
      %24 = tpu.dynamic_rotate %17 by %c15_i32_15 dim 1 : vector<4x16x128xf32>, i32 -> vector<4x16x128xf32>
      %25 = arith.addf %23, %24 : vector<4x16x128xf32>
      %26 = vector.extract_strided_slice %17 {offsets = [0, 1, 0], sizes = [4, 1, 128], strides = [1, 1, 1]} : vector<4x16x128xf32> to vector<4x1x128xf32>
      %27 = vector.extract_strided_slice %17 {offsets = [0, 15, 0], sizes = [4, 1, 128], strides = [1, 1, 1]} : vector<4x16x128xf32> to vector<4x1x128xf32>
      %28 = arith.subf %26, %27 : vector<4x1x128xf32>
      %29 = vector.extract_strided_slice %17 {offsets = [0, 14, 0], sizes = [4, 1, 128], strides = [1, 1, 1]} : vector<4x16x128xf32> to vector<4x1x128xf32>
      %30 = vector.extract_strided_slice %17 {offsets = [0, 0, 0], sizes = [4, 1, 128], strides = [1, 1, 1]} : vector<4x16x128xf32> to vector<4x1x128xf32>
      %31 = arith.subf %29, %30 : vector<4x1x128xf32>
      %cst_16 = arith.constant 0.000000e+00 : f32
      %32 = vector.shape_cast %22 : vector<1x16x1xi1> to vector<1x16x1xi1>
      %33 = vector.broadcast %32 : vector<1x16x1xi1> to vector<4x16x128xi1>
      %34 = vector.shape_cast %31 : vector<4x1x128xf32> to vector<4x1x128xf32>
      %35 = vector.broadcast %34 : vector<4x1x128xf32> to vector<4x16x128xf32>
      %36 = vector.broadcast %cst_16 : f32 to vector<4x16x128xf32>
      %37 = arith.select %33, %35, %36 : vector<4x16x128xi1>, vector<4x16x128xf32>
      %38 = vector.shape_cast %20 : vector<1x16x1xi1> to vector<1x16x1xi1>
      %39 = vector.broadcast %38 : vector<1x16x1xi1> to vector<4x16x128xi1>
      %40 = vector.shape_cast %28 : vector<4x1x128xf32> to vector<4x1x128xf32>
      %41 = vector.broadcast %40 : vector<4x1x128xf32> to vector<4x16x128xf32>
      %42 = arith.select %39, %41, %37 : vector<4x16x128xi1>, vector<4x16x128xf32>
      %cst_17 = arith.constant 0.786986052 : f32
      %43 = vector.broadcast %cst_17 : f32 to vector<4x16x128xf32>
      %44 = arith.mulf %43, %17 : vector<4x16x128xf32>
      %45 = arith.addf %25, %42 : vector<4x16x128xf32>
      %cst_18 = arith.constant 0.106506981 : f32
      %46 = vector.broadcast %cst_18 : f32 to vector<4x16x128xf32>
      %47 = arith.mulf %46, %45 : vector<4x16x128xf32>
      %48 = arith.addf %44, %47 : vector<4x16x128xf32>
      %49 = tpu.iota {dimensions = array<i32: 2>} : vector<1x1x128xi32>
      %c0_i32_19 = arith.constant 0 : i32
      %50 = vector.broadcast %c0_i32_19 : i32 to vector<1x1x128xi32>
      %51 = arith.cmpi eq, %49, %50 : vector<1x1x128xi32>
      %c127_i32 = arith.constant 127 : i32
      %52 = vector.broadcast %c127_i32 : i32 to vector<1x1x128xi32>
      %53 = arith.cmpi eq, %49, %52 : vector<1x1x128xi32>
      %c1_i32_20 = arith.constant 1 : i32
      %54 = tpu.dynamic_rotate %48 by %c1_i32_20 dim 2 : vector<4x16x128xf32>, i32 -> vector<4x16x128xf32>
      %c127_i32_21 = arith.constant 127 : i32
      %55 = tpu.dynamic_rotate %48 by %c127_i32_21 dim 2 : vector<4x16x128xf32>, i32 -> vector<4x16x128xf32>
      %56 = arith.addf %54, %55 : vector<4x16x128xf32>
      %57 = vector.extract_strided_slice %48 {offsets = [0, 0, 1], sizes = [4, 16, 1], strides = [1, 1, 1]} : vector<4x16x128xf32> to vector<4x16x1xf32>
      %58 = vector.extract_strided_slice %48 {offsets = [0, 0, 127], sizes = [4, 16, 1], strides = [1, 1, 1]} : vector<4x16x128xf32> to vector<4x16x1xf32>
      %59 = arith.subf %57, %58 : vector<4x16x1xf32>
      %60 = vector.extract_strided_slice %48 {offsets = [0, 0, 126], sizes = [4, 16, 1], strides = [1, 1, 1]} : vector<4x16x128xf32> to vector<4x16x1xf32>
      %61 = vector.extract_strided_slice %48 {offsets = [0, 0, 0], sizes = [4, 16, 1], strides = [1, 1, 1]} : vector<4x16x128xf32> to vector<4x16x1xf32>
      %62 = arith.subf %60, %61 : vector<4x16x1xf32>
      %cst_22 = arith.constant 0.000000e+00 : f32
      %63 = vector.shape_cast %53 : vector<1x1x128xi1> to vector<1x1x128xi1>
      %64 = vector.broadcast %63 : vector<1x1x128xi1> to vector<4x16x128xi1>
      %65 = vector.shape_cast %62 : vector<4x16x1xf32> to vector<4x16x1xf32>
      %66 = vector.broadcast %65 : vector<4x16x1xf32> to vector<4x16x128xf32>
      %67 = vector.broadcast %cst_22 : f32 to vector<4x16x128xf32>
      %68 = arith.select %64, %66, %67 : vector<4x16x128xi1>, vector<4x16x128xf32>
      %69 = vector.shape_cast %51 : vector<1x1x128xi1> to vector<1x1x128xi1>
      %70 = vector.broadcast %69 : vector<1x1x128xi1> to vector<4x16x128xi1>
      %71 = vector.shape_cast %59 : vector<4x16x1xf32> to vector<4x16x1xf32>
      %72 = vector.broadcast %71 : vector<4x16x1xf32> to vector<4x16x128xf32>
      %73 = arith.select %70, %72, %68 : vector<4x16x128xi1>, vector<4x16x128xf32>
      %cst_23 = arith.constant 0.786986052 : f32
      %74 = vector.broadcast %cst_23 : f32 to vector<4x16x128xf32>
      %75 = arith.mulf %74, %48 : vector<4x16x128xf32>
      %76 = arith.addf %56, %73 : vector<4x16x128xf32>
      %cst_24 = arith.constant 0.106506981 : f32
      %77 = vector.broadcast %cst_24 : f32 to vector<4x16x128xf32>
      %78 = arith.mulf %77, %76 : vector<4x16x128xf32>
      %79 = arith.addf %75, %78 : vector<4x16x128xf32>
      %c4_i32 = arith.constant 4 : i32
      %80 = arith.muli %arg1, %c4_i32 : i32
      %81 = tpu.assume_multiple %80, 4 : i32
      %82 = arith.index_cast %81 : i32 to index
      %c0_25 = arith.constant 0 : index
      %c0_26 = arith.constant 0 : index
      %83 = vector.load %arg6[%82, %c0_25, %c0_26] : memref<4x16x128xf32, #tpu.memory_space<vmem>>, vector<4x16x128xf32>
      tpu.vector_store %arg6[%82, %c0_25, %c0_26], %79 {strides = array<i32>} : memref<4x16x128xf32, #tpu.memory_space<vmem>>, vector<4x16x128xf32>,
      %cst_27 = arith.constant dense<0x7F800000> : vector<16x128xf32>
      %84 = vector.multi_reduction <minimumf>, %79, %cst_27 [0] : vector<4x16x128xf32> to vector<16x128xf32>
      %cst_28 = arith.constant dense<0xFF800000> : vector<16x128xf32>
      %85 = vector.multi_reduction <maximumf>, %79, %cst_28 [0] : vector<4x16x128xf32> to vector<16x128xf32>
      %c0_29 = arith.constant 0 : index
      %c0_30 = arith.constant 0 : index
      %86 = vector.load %arg7[%c0_29, %c0_30] : memref<16x128xf32, #tpu.memory_space<vmem>>, vector<16x128xf32>
      %87 = arith.minimumf %86, %84 : vector<16x128xf32>
      %c0_31 = arith.constant 0 : index
      %c0_32 = arith.constant 0 : index
      %88 = vector.load %arg7[%c0_31, %c0_32] : memref<16x128xf32, #tpu.memory_space<vmem>>, vector<16x128xf32>
      tpu.vector_store %arg7[%c0_31, %c0_32], %87 {strides = array<i32>} : memref<16x128xf32, #tpu.memory_space<vmem>>, vector<16x128xf32>,
      %c0_33 = arith.constant 0 : index
      %c0_34 = arith.constant 0 : index
      %89 = vector.load %arg8[%c0_33, %c0_34] : memref<16x128xf32, #tpu.memory_space<vmem>>, vector<16x128xf32>
      %90 = arith.maximumf %89, %85 : vector<16x128xf32>
      %c0_35 = arith.constant 0 : index
      %c0_36 = arith.constant 0 : index
      %91 = vector.load %arg8[%c0_35, %c0_36] : memref<16x128xf32, #tpu.memory_space<vmem>>, vector<16x128xf32>
      tpu.vector_store %arg8[%c0_35, %c0_36], %90 {strides = array<i32>} : memref<16x128xf32, #tpu.memory_space<vmem>>, vector<16x128xf32>,
      %c0_i32_37 = arith.constant 0 : i32
      %92 = arith.cmpi eq, %arg1, %c0_i32_37 : i32
      %93 = arith.extui %92 : i1 to i32
      %c0_i32_38 = arith.constant 0 : i32
      %94 = arith.cmpi ne, %93, %c0_i32_38 : i32
      scf.if %94 {
        %c0_39 = arith.constant 0 : index
        %c0_40 = arith.constant 0 : index
        %95 = vector.load %arg7[%c0_39, %c0_40] : memref<16x128xf32, #tpu.memory_space<vmem>>, vector<16x128xf32>
        %cst_41 = arith.constant dense<0x7F800000> : vector<16xf32>
        %96 = vector.multi_reduction <minimumf>, %95, %cst_41 [1] : vector<16x128xf32> to vector<16xf32>
        %97 = vector.shape_cast %96 : vector<16xf32> to vector<16x1xf32>
        %cst_42 = arith.constant dense<0x7F800000> : vector<1xf32>
        %98 = vector.multi_reduction <minimumf>, %97, %cst_42 [0] : vector<16x1xf32> to vector<1xf32>
        %99 = vector.shape_cast %98 : vector<1xf32> to vector<1x1xf32>
        %c0_43 = arith.constant 0 : index
        %c0_44 = arith.constant 0 : index
        %100 = vector.load %arg8[%c0_43, %c0_44] : memref<16x128xf32, #tpu.memory_space<vmem>>, vector<16x128xf32>
        %cst_45 = arith.constant dense<0xFF800000> : vector<16xf32>
        %101 = vector.multi_reduction <maximumf>, %100, %cst_45 [1] : vector<16x128xf32> to vector<16xf32>
        %102 = vector.shape_cast %101 : vector<16xf32> to vector<16x1xf32>
        %cst_46 = arith.constant dense<0xFF800000> : vector<1xf32>
        %103 = vector.multi_reduction <maximumf>, %102, %cst_46 [0] : vector<16x1xf32> to vector<1xf32>
        %104 = vector.shape_cast %103 : vector<1xf32> to vector<1x1xf32>
        %105 = arith.subf %104, %99 : vector<1x1xf32>
        %cst_47 = arith.constant 9.99999997E-7 : f32
        %106 = vector.broadcast %cst_47 : f32 to vector<1x1xf32>
        %107 = arith.maximumf %105, %106 : vector<1x1xf32>
        %cst_48 = arith.constant 2.000000e+00 : f32
        %108 = vector.broadcast %cst_48 : f32 to vector<1x1xf32>
        %109 = arith.divf %108, %107 : vector<1x1xf32>
        %c0_49 = arith.constant 0 : index
        %c0_50 = arith.constant 0 : index
        %110 = vector.load %arg9[%c0_49, %c0_50] : memref<8x128xf32, #tpu.memory_space<vmem>>, vector<1x1xf32>
        tpu.vector_store %arg9[%c0_49, %c0_50], %109 {strides = array<i32>} : memref<8x128xf32, #tpu.memory_space<vmem>>, vector<1x1xf32>,
        %cst_51 = arith.constant 0.000000e+00 : f32
        %111 = vector.broadcast %cst_51 : f32 to vector<1x1xf32>
        %112 = arith.subf %111, %99 : vector<1x1xf32>
        %113 = arith.mulf %112, %109 : vector<1x1xf32>
        %cst_52 = arith.constant 1.000000e+00 : f32
        %114 = vector.broadcast %cst_52 : f32 to vector<1x1xf32>
        %115 = arith.subf %113, %114 : vector<1x1xf32>
        %c1 = arith.constant 1 : index
        %c0_53 = arith.constant 0 : index
        %116 = vector.load %arg9[%c1, %c0_53] : memref<8x128xf32, #tpu.memory_space<vmem>>, vector<1x1xf32>
        tpu.vector_store %arg9[%c1, %c0_53], %115 {strides = array<i32>} : memref<8x128xf32, #tpu.memory_space<vmem>>, vector<1x1xf32>,
      } else {
      }
    } else {
    }
    %c1_i32 = arith.constant 1 : i32
    %3 = arith.cmpi eq, %arg0, %c1_i32 : i32
    %4 = arith.extui %3 : i1 to i32
    %c0_i32_1 = arith.constant 0 : i32
    %5 = arith.cmpi ne, %4, %c0_i32_1 : i32
    scf.if %5 {
      %c4_i32 = arith.constant 4 : i32
      %6 = arith.muli %arg1, %c4_i32 : i32
      %7 = tpu.assume_multiple %6, 4 : i32
      %8 = arith.index_cast %7 : i32 to index
      %c0 = arith.constant 0 : index
      %c0_2 = arith.constant 0 : index
      %9 = vector.load %arg6[%8, %c0, %c0_2] : memref<4x16x128xf32, #tpu.memory_space<vmem>>, vector<4x16x128xf32>
      %c0_3 = arith.constant 0 : index
      %c0_4 = arith.constant 0 : index
      %10 = vector.load %arg9[%c0_3, %c0_4] : memref<8x128xf32, #tpu.memory_space<vmem>>, vector<1x1xf32>
      %11 = vector.shape_cast %10 : vector<1x1xf32> to vector<1x1x1xf32>
      %12 = vector.broadcast %11 : vector<1x1x1xf32> to vector<4x16x128xf32>
      %13 = arith.mulf %9, %12 : vector<4x16x128xf32>
      %c1 = arith.constant 1 : index
      %c0_5 = arith.constant 0 : index
      %14 = vector.load %arg9[%c1, %c0_5] : memref<8x128xf32, #tpu.memory_space<vmem>>, vector<1x1xf32>
      %15 = vector.shape_cast %14 : vector<1x1xf32> to vector<1x1x1xf32>
      %16 = vector.broadcast %15 : vector<1x1x1xf32> to vector<4x16x128xf32>
      %17 = arith.addf %13, %16 : vector<4x16x128xf32>
      %c0_6 = arith.constant 0 : index
      %c0_7 = arith.constant 0 : index
      %c0_8 = arith.constant 0 : index
      %18 = vector.load %arg5[%c0_6, %c0_7, %c0_8] : memref<4x16x128xf32, #tpu.memory_space<vmem>>, vector<4x16x128xf32>
      tpu.vector_store %arg5[%c0_6, %c0_7, %c0_8], %17 {strides = array<i32>} : memref<4x16x128xf32, #tpu.memory_space<vmem>>, vector<4x16x128xf32>,
    } else {
    }
    return
  }
  func.func @transform_0(%arg0: i32, %arg1: i32) -> (i32, i32, i32) {
    %c1_i32 = arith.constant 1 : i32
    %0 = arith.subi %c1_i32, %arg0 : i32
    %1 = arith.muli %arg1, %0 : i32
    %c0_i32 = arith.constant 0 : i32
    %2 = arith.muli %c0_i32, %arg0 : i32
    %3 = arith.addi %1, %2 : i32
    %c0_i32_0 = arith.constant 0 : i32
    %c0_i32_1 = arith.constant 0 : i32
    %c0_i32_2 = arith.constant 0 : i32
    return %3, %c0_i32_0, %c0_i32_1 : i32, i32, i32
  }
  func.func @transform_1(%arg0: i32, %arg1: i32) -> (i32, i32, i32) {
    %c1_i32 = arith.constant 1 : i32
    %0 = arith.subi %c1_i32, %arg0 : i32
    %1 = arith.muli %arg1, %0 : i32
    %c0_i32 = arith.constant 0 : i32
    %2 = arith.muli %c0_i32, %arg0 : i32
    %3 = arith.addi %1, %2 : i32
    %c0_i32_0 = arith.constant 0 : i32
    %c0_i32_1 = arith.constant 0 : i32
    %c0_i32_2 = arith.constant 0 : i32
    return %3, %c0_i32_0, %c0_i32_1 : i32, i32, i32
  }
  func.func @transform_2(%arg0: i32, %arg1: i32) -> (i32, i32, i32) {
    %c1_i32 = arith.constant 1 : i32
    %0 = arith.subi %c1_i32, %arg0 : i32
    %1 = arith.muli %arg1, %0 : i32
    %c0_i32 = arith.constant 0 : i32
    %2 = arith.muli %c0_i32, %arg0 : i32
    %3 = arith.addi %1, %2 : i32
    %c0_i32_0 = arith.constant 0 : i32
    %c0_i32_1 = arith.constant 0 : i32
    %c0_i32_2 = arith.constant 0 : i32
    return %3, %c0_i32_0, %c0_i32_1 : i32, i32, i32
  }
  func.func @transform_3(%arg0: i32, %arg1: i32) -> (i32, i32, i32) {
    %0 = arith.muli %arg1, %arg0 : i32
    %c0_i32 = arith.constant 0 : i32
    %c0_i32_0 = arith.constant 0 : i32
    %c0_i32_1 = arith.constant 0 : i32
    return %0, %c0_i32, %c0_i32_0 : i32, i32, i32
  }
}

</mosaic_0001>

<bundles_post_ra>
// kernel: tpu_custom_call.1
= control target key start
LH: loop header
LB: loop body
LE: loop exit
PB: predicated region body
PF: predicated region fallthrough
CT: control target
= control target key end

     0   :  { %8 = vsyncpa [#allocation7], 0  ;;  %s1720_s0 = inlined_call_operand.hbm [shape: f32[4,16,128], index: 0, kind: input, shape index: {}]   ;;  %s1721_s1 = inlined_call_operand.hbm [shape: f32[4,16,128], index: 1, kind: input, shape index: {}]   ;;  %s1722_s2 = inlined_call_operand.hbm [shape: f32[4,16,128], index: 2, kind: input, shape index: {}]   ;;  %s1723_s3 = inlined_call_operand.hbm [shape: f32[4,16,128], index: 3, kind: output, shape index: {}]  }
   0x1   :  { %10 = vsyncpa [#allocation7 + $0x1], 0 }
   0x2   :  { %11 = vsyncpa [#allocation10], 0 }
   0x3   :  { %13 = vsyncpa [#allocation10 + $0x1], 0 }
   0x4   :  { %14 = vsyncpa [#allocation8], 0 }
   0x5   :  { %16 = vsyncpa [#allocation8 + $0x1], 0  ;;  %s1350_s12 = smov 0   ;;  %s1352_s13 = smov 0  }
   0x6   :  { %s1354_s14 = smov 0  }
   0x7 LB: > { %s1366_s15 = sadd.s32 4294967295, %s1314_s14   ;;  %s1065_s16 = sadd.s32 4294967294, %s1314_s14   ;;  %s1314_s14 = sphi %s1354_s14, %s22_s14   ;;  %s1310_s13 = sphi %s1352_s13, %s1731_s13   ;;  %s1306_s12 = sphi %s1350_s12, %s1730_s12  }
   0x8   : > { %p1116_p1 = scmp.lt.s32.totalorder %s1314_s14, 2  ;;  %p1117_p2 = scmp.eq.s32.totalorder %s1314_s14, 0 }
   0x9   : > { %s194_s17 = sand.u32 1, %s1314_s14   ;;  %s1316_s19 = smov [#allocation9]  }
   0xa   : > { %p1373_p3 = pnand %p1117_p2, %p1116_p1  ;;  %s208_s20 = sshll.u32 %s1316_s19, 4  ;;  %s209_s20 = int_to_ptr.vmem [resolvable:$true] %s208_s20 }
   0xb   : > { %s1378_s21 = scalar_lea.sflag [#allocation10], %s194_s17  ;;  %s1170_s24 = scalar_lea.hbm %s1721_s1, 1024 }
   0xc   : > { %p1171_p5 = scmp.ne.s32.totalorder %s1721_s1, %s1170_s24  ;;  %p1388_p6 = pneg %p1373_p3 }
   0xd   : > { %p1177_p9 = scmp.lt.u32.totalorder %s1170_s24, %s1721_s1 }
   0xe   : > { %p1173_p7 = pnand %p1388_p6, %p1171_p5 }
  0x10   : > { %p1174_p8 = pneg %p1173_p7 }
  0x12   : > { %p1179_p10 = pnand %p1177_p9, %p1174_p8 }
  0x14   : > { %1182 = shalt.err (!%p1179_p10)
}
  0x15   : > { %s1183_s30 = scalar_lea.vmem %s209_s20, 1024  ;;  %s1190_s4 = scalar_lea.vmem %s209_s20, 2048 }
  0x16   : > { %p1184_p11 = scmp.ne.s32.totalorder %s209_s20, %s1183_s30  ;;  %p1191_p1 = scmp.lt.s32.totalorder %s209_s20, %s209_s20 }
  0x17   : > { %p1192_p2 = scmp.lt.s32.totalorder %s1190_s4, %s1183_s30 }
  0x18   : > { %p1186_p12 = pnand %p1184_p11, %p1388_p6 }
  0x19   : > { %p1193_p0 = por %p1192_p2, %p1191_p1 }
  0x1a   : > { %p1187_p13 = pneg %p1186_p12 }
  0x1c   : > { %p1194_p4 = pnand %p1193_p0, %p1187_p13 }
  0x1e   : > { %1197 = shalt.err (!%p1194_p4)
}
  0x1f   : > { %s1317_s5 = smov 128   ;;  %s1318_s6 = smov 8  }
  0x20   : > { %1108 = dma.hbm_to_vmem [thread:$0]  (!%p1373_p3), %s1721_s1, 1024, %s209_s20, %s1378_s21, %s1317_s5, %s1317_s5, %s1318_s6  }
  0x21   : > { %p240_p5 = scmp.lt.s32.totalorder %s1314_s14, 3  ;;  %p1726_p7 = scmp.ge.s32.totalorder %s1314_s14, 1 }
  0x22   : > { %s34_s10 = sadd.s32 1, %s1310_s13  ;;  %s1319_s11 = smov [#allocation6]  }
  0x23   : > { %p1411_p0 = pnand %p1726_p7, %p240_p5  ;;  %p36_p4 = scmp.ge.s32.totalorder %s34_s10, 2 }
  0x24   : > { %s184_s17 = sshll.u32 %s1319_s11, 4  ;;  %s1198_s23 = scalar_lea.hbm %s1720_s0, 1024  ;;  %s185_s17 = int_to_ptr.vmem [resolvable:$true] %s184_s17 }
  0x25   : > { %s1727_s9 = scalar_select %p1411_p0, 1, 0 }
  0x26   : > { %s1733_s10 = smov (%p36_p4, %s34_s10), 0  ;;  %p1199_p8 = scmp.ne.s32.totalorder %s1720_s0, %s1198_s23 }
  0x27   : > { %p1205_p11 = scmp.lt.u32.totalorder %s1198_s23, %s1720_s0 }
  0x28   : > { %p1201_p9 = pnand %p1199_p8, %p1388_p6 }
  0x2a   : > { %p1202_p10 = pneg %p1201_p9 }
  0x2c   : > { %p1207_p12 = pnand %p1205_p11, %p1202_p10 }
  0x2e   : > { %1210 = shalt.err (!%p1207_p12)
}
  0x2f   : > { %s1211_s28 = scalar_lea.vmem %s185_s17, 1024  ;;  %s1218_s29 = scalar_lea.vmem %s185_s17, 2048 }
  0x30   : > { %p1212_p13 = scmp.ne.s32.totalorder %s185_s17, %s1211_s28  ;;  %p1219_p5 = scmp.lt.s32.totalorder %s185_s17, %s185_s17 }
  0x31   : > { %p1220_p7 = scmp.lt.s32.totalorder %s1218_s29, %s1211_s28 }
  0x32   : > { %p1214_p1 = pnand %p1212_p13, %p1388_p6 }
  0x33   : > { %p1221_p4 = por %p1220_p7, %p1219_p5 }
  0x34   : > { %p1215_p2 = pneg %p1214_p1 }
  0x36   : > { %p1222_p0 = pnand %p1221_p4, %p1215_p2 }
  0x38   : > { %1225 = shalt.err (!%p1222_p0)
}
  0x39   : > { %1105 = dma.hbm_to_vmem [thread:$0]  (!%p1373_p3), %s1720_s0, 1024, %s185_s17, [#allocation7], %s1317_s5, %s1317_s5, %s1318_s6  }
  0x3a   : > { %s1320_s7 = smov [#allocation11]   ;;  %s1226_s22 = scalar_lea.hbm %s1722_s2, 1024 }
  0x3b   : > { %s232_s8 = sshll.u32 %s1320_s7, 4  ;;  %p1227_p0 = scmp.ne.s32.totalorder %s1722_s2, %s1226_s22  ;;  %s233_s8 = int_to_ptr.vmem [resolvable:$true] %s232_s8 }
  0x3c   : > { %p1233_p10 = scmp.lt.u32.totalorder %s1226_s22, %s1722_s2 }
  0x3d   : > { %p1229_p8 = pnand %p1227_p0, %p1388_p6 }
  0x3f   : > { %p1230_p9 = pneg %p1229_p8 }
  0x41   : > { %p1235_p11 = pnand %p1233_p10, %p1230_p9 }
  0x43   : > { %1238 = shalt.err (!%p1235_p11)
}
  0x44   : > { %s1239_s17 = scalar_lea.vmem %s233_s8, 1024  ;;  %s1246_s26 = scalar_lea.vmem %s233_s8, 2048 }
  0x45   : > { %p1240_p12 = scmp.ne.s32.totalorder %s233_s8, %s1239_s17  ;;  %p1247_p2 = scmp.lt.s32.totalorder %s233_s8, %s233_s8 }
  0x46   : > { %p1248_p5 = scmp.lt.s32.totalorder %s1246_s26, %s1239_s17 }
  0x47   : > { %p1242_p13 = pnand %p1240_p12, %p1388_p6 }
  0x48   : > { %p1249_p7 = por %p1248_p5, %p1247_p2 }
  0x49   : > { %p1243_p1 = pneg %p1242_p13 }
  0x4b   : > { %p1250_p4 = pnand %p1249_p7, %p1243_p1 }
  0x4d   : > { %1253 = shalt.err (!%p1250_p4)
}
  0x4e   : > { %1111 = dma.hbm_to_vmem [thread:$0]  (!%p1373_p3), %s1722_s2, 1024, %s233_s8, %s1378_s21, %s1317_s5, %s1317_s5, %s1318_s6  }
  0x4f   : > { %p1728_p0 = scmp.ne.s32.totalorder %s1727_s9, 0 }
  0x50   : > { %p1120_p6 = scmp.eq.s32.totalorder (!%p1728_p0), %s1366_s15, 0 }
  0x51   : > { %244 = sbr.rel (%p1728_p0) target bundleno = 691 (0x2b3), region = 32 }
  0x58   : > { %1293 = dma.done.wait (%p1120_p6), [#allocation7], 1024  }
  0x59   : > { %1295 = vsyncadd (%p1120_p6), [#allocation7], 4294966272  ;;  %s255_s27 = sand.u32 1, %s1366_s15  }
  0x5a   : > { %s256_s30 = scalar_lea.sflag [#allocation10], %s255_s27 }
  0x5b   : > { %1297 = dma.done.wait (%p1120_p6), %s256_s30, 2048  }
  0x5c   : > { %1299 = vsyncadd (%p1120_p6), %s256_s30, 4294965248  ;;  %p1075_p8 = scmp.ne.s32.totalorder %s1306_s12, 0 }
  0x5d   : > { %v326_v0 = vld [vmem:[#allocation6 + $0x10] sm:$0xff] (!%p1075_p8)  ;;  %v327_v1 = vld [vmem:[#allocation6 + $0x18] sm:$0xff] (!%p1075_p8)  ;;  %v380_v3 = vlaneseq (!%p1075_p8)  ;;  %v324_v10 = vld [vmem:[#allocation6] sm:$0xff] (!%p1075_p8)  ;;  %s1321_s18 = smov (!%p1075_p8), 126   ;;  %s1323_s21 = smov (!%p1075_p8), 2   ;;  %vm865_vm14 = vcmask (!%p1075_p8), 0  }
  0x5e   : > { %315 = sbr.rel (%p1075_p8) target bundleno = 603 (0x25b), region = 48  ;;  %v334_v2 = vld [vmem:[#allocation9 + $0x10] sm:$0xff] (!%p1075_p8)  ;;  %v335_v4 = vld [vmem:[#allocation9 + $0x18] sm:$0xff] (!%p1075_p8)  ;;  %v350_v7 = vadd.f32 (!%p1075_p8), 1.0, %v326_v0  ;;  %v351_v8 = vadd.f32 (!%p1075_p8), 1.0, %v327_v1  ;;  %v325_v11 = vld [vmem:[#allocation6 + $0x8] sm:$0xff] (!%p1075_p8) }
  0x5f   : > { %v342_v5 = vld [vmem:[#allocation11 + $0x10] sm:$0xff] (!%p1075_p8)  ;;  %v343_v6 = vld [vmem:[#allocation11 + $0x18] sm:$0xff] (!%p1075_p8)  ;;  %v1467_v9 = vshrl.u32 (!%p1075_p8), %v380_v3, 7  ;;  %v340_v14 = vld [vmem:[#allocation11] sm:$0xff] (!%p1075_p8)  ;;  %v348_v16 = vadd.f32 (!%p1075_p8), 1.0, %v324_v10  ;;  %v349_v17 = vadd.f32 (!%p1075_p8), 1.0, %v325_v11 }
  0x60   : > { %vm358_vm0 = vcmp.eq.f32.partialorder (!%p1075_p8), %v342_v5, 0.0  ;;  %vm359_vm1 = vcmp.eq.f32.partialorder (!%p1075_p8), %v343_v6, 0.0  ;;  %v366_v12 = vmul.f32 (!%p1075_p8), %v350_v7, %v334_v2  ;;  %v367_v13 = vmul.f32 (!%p1075_p8), %v351_v8, %v335_v4  ;;  %v341_v15 = vld [vmem:[#allocation11 + $0x8] sm:$0xff] (!%p1075_p8)  ;;  %v332_v18 = vld [vmem:[#allocation9] sm:$0xff] (!%p1075_p8)  ;;  %s1324_s5 = smov (!%p1075_p8), 1   ;;  %s1325_s6 = smov (!%p1075_p8), 127  }
  0x61   : > { %vm383_vm2 = vcmp.eq.s32.totalorder (!%p1075_p8), %v1467_v9, 0  ;;  %vm395_vm3 = vcmp.lt.s32.totalorder (!%p1075_p8), %v1467_v9, 1  ;;  %vm412_vm4 = vcmp.lt.s32.totalorder (!%p1075_p8), %v1467_v9, 7  ;;  %v333_v19 = vld [vmem:[#allocation9 + $0x8] sm:$0xff] (!%p1075_p8)  ;;  %vm356_vm5 = vcmp.eq.f32.partialorder (!%p1075_p8), %v340_v14, 0.0  ;;  %v328_v57 = vld [vmem:[#allocation6 + $0x20] sm:$0xff] (!%p1075_p8) }
  0x62   : > { %v374_v20 = vsel (!%p1075_p8), %vm358_vm0, %v366_v12, %v350_v7  ;;  %v375_v21 = vsel (!%p1075_p8), %vm359_vm1, %v367_v13, %v351_v8  ;;  %vm357_vm6 = vcmp.eq.f32.partialorder (!%p1075_p8), %v341_v15, 0.0  ;;  %v1475_v27 = vsub.s32 (!%p1075_p8), 1, %v1467_v9  ;;  %v329_v58 = vld [vmem:[#allocation6 + $0x28] sm:$0xff] (!%p1075_p8)  ;;  %v344_v63 = vld [vmem:[#allocation11 + $0x20] sm:$0xff] (!%p1075_p8) }
  0x63   : > { %v388_v22 = vrot.slane (!%p1075_p8), %v374_v20, 7  ;;  %v392_v23 = vrot.slane (!%p1075_p8), %v375_v21, 7  ;;  %v405_v24 = vrot.slane (!%p1075_p8), %v374_v20, 1  ;;  %v409_v25 = vrot.slane (!%p1075_p8), %v375_v21, 1  ;;  %v336_v5 = vld [vmem:[#allocation9 + $0x20] sm:$0xff] (!%p1075_p8)  ;;  %v345_v6 = vld [vmem:[#allocation11 + $0x28] sm:$0xff] (!%p1075_p8) }
  0x64   : > { %v434_v26 = vrot.slane (!%p1075_p8), %v375_v21, 6  ;;  %v364_v28 = vmul.f32 (!%p1075_p8), %v348_v16, %v332_v18  ;;  %v365_v29 = vmul.f32 (!%p1075_p8), %v349_v17, %v333_v19  ;;  %v519_v32 = vmul.f32 (!%p1075_p8), 0.78698605, %v374_v20  ;;  %v337_v10 = vld [vmem:[#allocation9 + $0x28] sm:$0xff] (!%p1075_p8) }
  0x65   : > { %v401_v30 = vsel %vm395_vm3, %v392_v23, %v388_v22  ;;  %v414_v31 = vsel %vm412_vm4, %v405_v24, %v409_v25  ;;  %v1482_v33 = vadd.s32 8, %v1467_v9  ;;  %v397_v45 = vsel %vm395_vm3, %v388_v22, %v392_v23 }
  0x66   : > { %v423_v34 = vadd.f32 %v414_v31, %v401_v30  ;;  %v442_v35 = vsub.f32 %v374_v20, %v434_v26  ;;  %v372_v36 = vsel %vm356_vm5, %v364_v28, %v348_v16  ;;  %v373_v37 = vsel %vm357_vm6, %v365_v29, %v349_v17  ;;  %v330_v16 = vld [vmem:[#allocation6 + $0x30] sm:$0xff]  ;;  %v331_v26 = vld [vmem:[#allocation6 + $0x38] sm:$0xff] }
  0x67   : > { %v387_v38 = vrot.slane %v372_v36, 7  ;;  %v391_v39 = vrot.slane %v373_v37, 7  ;;  %v404_v40 = vrot.slane %v372_v36, 1  ;;  %v408_v41 = vrot.slane %v373_v37, 1 }
  0x68   : > { %v500_v42 = vrot.slane %v442_v35, %v1475_v27  ;;  %v433_v43 = vrot.slane %v373_v37, 6  ;;  %v517_v44 = vmul.f32 0.78698605, %v372_v36  ;;  %v418_v48 = vsel %vm412_vm4, %v409_v25, %v405_v24 }
  0x69   : > { %v400_v46 = vsel %vm395_vm3, %v391_v39, %v387_v38  ;;  %v413_v47 = vsel %vm412_vm4, %v404_v40, %v408_v41  ;;  %v450_v49 = vrot.slane %v374_v20, 2  ;;  %vm386_vm7 = vcmp.eq.s32.totalorder %v1482_v33, 15 }
  0x6a   : > { %v511_v50 = vsel %vm383_vm2, %v500_v42, 0.0  ;;  %v421_v51 = vadd.f32 %v413_v47, %v400_v46  ;;  %v441_v52 = vsub.f32 %v372_v36, %v433_v43  ;;  %v424_v54 = vadd.f32 %v418_v48, %v397_v45  ;;  %v347_v43 = vld [vmem:[#allocation11 + $0x38] sm:$0xff] }
  0x6b   : > { %v527_v53 = vadd.f32 %v511_v50, %v423_v34  ;;  %v458_v55 = vsub.f32 %v375_v21, %v450_v49  ;;  %v1499_v56 = vsub.s32 6, %v1467_v9  ;;  %v396_v60 = vsel %vm395_vm3, %v387_v38, %v391_v39  ;;  %v338_v39 = vld [vmem:[#allocation9 + $0x30] sm:$0xff]  ;;  %v339_v49 = vld [vmem:[#allocation9 + $0x38] sm:$0xff] }
  0x6c   : > { %v496_v59 = vrot.slane %v441_v52, %v1475_v27  ;;  %v417_v61 = vsel %vm412_vm4, %v408_v41, %v404_v40  ;;  %v449_v62 = vrot.slane %v372_v36, 2  ;;  %v520_v2 = vmul.f32 0.78698605, %v375_v21 }
  0x6d   : > { %v535_v0 = vmul.f32 0.10650698, %v527_v53  ;;  %v472_v1 = vrot.slane %v458_v55, %v1499_v56  ;;  %v422_v4 = vadd.f32 %v417_v61, %v396_v60  ;;  %v352_v11 = vadd.f32 1.0, %v328_v57 }
  0x6e   : > { %v509_v7 = vsel %vm383_vm2, %v496_v59, 0.0  ;;  %v457_v8 = vsub.f32 %v373_v37, %v449_v62  ;;  %v353_v12 = vadd.f32 1.0, %v329_v58  ;;  %vm360_vm8 = vcmp.eq.f32.partialorder %v344_v63, 0.0 }
  0x6f   : > { %v1509_v13 = vadd.f32 %v535_v0, %v519_v32  ;;  %v525_v14 = vadd.f32 %v509_v7, %v421_v51  ;;  %v484_v15 = vsel %vm386_vm7, %v472_v1, 0.0  ;;  %vm361_vm9 = vcmp.eq.f32.partialorder %v345_v6, 0.0 }
  0x70   : > { %v528_v17 = vadd.f32 %v484_v15, %v424_v54  ;;  %v468_v18 = vrot.slane %v457_v8, %v1499_v56  ;;  %v368_v19 = vmul.f32 %v352_v11, %v336_v5  ;;  %v518_v21 = vmul.f32 0.78698605, %v373_v37  ;;  %v346_v37 = vld [vmem:[#allocation11 + $0x30] sm:$0xff] }
  0x71   : > { %637 = vrot.lane.b32.xlu1 %v1509_v13, %s1321_s18  ;;  %v533_v20 = vmul.f32 0.10650698, %v525_v14  ;;  %v369_v22 = vmul.f32 %v353_v12, %v337_v10  ;;  %v354_v28 = vadd.f32 1.0, %v330_v16  ;;  %v355_v45 = vadd.f32 1.0, %v331_v26 }
  0x72   : > { %v536_v23 = vmul.f32 0.10650698, %v528_v17  ;;  %v482_v24 = vsel %vm386_vm7, %v468_v18, 0.0  ;;  %v376_v25 = vsel %vm360_vm8, %v368_v19, %v352_v11  ;;  %vm362_vm10 = vcmp.eq.f32.partialorder %v346_v37, 0.0 }
  0x73   : > { %v1518_v29 = vadd.f32 %v533_v20, %v517_v44  ;;  %v526_v30 = vadd.f32 %v482_v24, %v422_v4  ;;  %v377_v31 = vsel %vm361_vm9, %v369_v22, %v353_v12  ;;  %v389_v32 = vrot.slane %v376_v25, 7 }
  0x74   : > { %v1520_v34 = vadd.f32 %v536_v23, %v520_v2  ;;  %v393_v35 = vrot.slane %v377_v31, 7  ;;  %v406_v36 = vrot.slane %v376_v25, 1  ;;  %v410_v38 = vrot.slane %v377_v31, 1 }
  0x75   : > { %633 = vrot.lane.b32.xlu0 %v1518_v29, %s1321_s18  ;;  %v534_v40 = vmul.f32 0.10650698, %v526_v30  ;;  %v451_v41 = vrot.slane %v376_v25, 2  ;;  %v435_v42 = vrot.slane %v377_v31, 6  ;;  %vm363_vm11 = vcmp.eq.f32.partialorder %v347_v43, 0.0 }
  0x76   : > { %639 = vrot.lane.b32.xlu1 %v1520_v34, %s1321_s18  ;;  %v398_v44 = vsel %vm395_vm3, %v389_v32, %v393_v35  ;;  %v419_v46 = vsel %vm412_vm4, %v410_v38, %v406_v36  ;;  %v402_v47 = vsel %vm395_vm3, %v393_v35, %v389_v32  ;;  %v415_v48 = vsel %vm412_vm4, %v406_v36, %v410_v38 }
  0x77   : > { %v1534_v50 = vadd.f32 %v534_v40, %v518_v21  ;;  %v459_v51 = vsub.f32 %v377_v31, %v451_v41  ;;  %v426_v52 = vadd.f32 %v419_v46, %v398_v44  ;;  %v443_v53 = vsub.f32 %v376_v25, %v435_v42 }
  0x78   : > { %v370_v54 = vmul.f32 %v354_v28, %v338_v39  ;;  %v425_v57 = vadd.f32 %v415_v48, %v402_v47  ;;  %v371_v58 = vmul.f32 %v355_v45, %v339_v49  ;;  %v522_v59 = vmul.f32 0.78698605, %v377_v31 }
  0x79   : > { %635 = vrot.lane.b32.xlu0 %v1534_v50, %s1321_s18  ;;  %v476_v55 = vrot.slane %v459_v51, %v1499_v56  ;;  %v504_v60 = vrot.slane %v443_v53, %v1475_v27  ;;  %v1322_v62 = vmov 126   ;;  %v521_v8 = vmul.f32 0.78698605, %v376_v25 }
  0x7a   : > { %v378_v61 = vsel %vm362_vm10, %v370_v54, %v354_v28  ;;  %1164 = vset.pattern.permute.xlu0 %v1322_v62  ;;  %1165 = vset.pattern.permute.xlu1 %v1322_v62  ;;  %v379_v0 = vsel %vm363_vm11, %v371_v58, %v355_v45 }
  0x7b   : > { %v486_v63 = vsel %vm386_vm7, %v476_v55, 0.0  ;;  %v390_v1 = vrot.slane %v378_v61, 7  ;;  %v407_v2 = vrot.slane %v378_v61, 1  ;;  %v513_v5 = vsel %vm383_vm2, %v504_v60, 0.0 }
  0x7c   : > { %v530_v4 = vadd.f32 %v486_v63, %v426_v52  ;;  %v394_v6 = vrot.slane %v379_v0, 7  ;;  %v411_v7 = vrot.slane %v379_v0, 1  ;;  %v529_v10 = vadd.f32 %v513_v5, %v425_v57 }
  0x7d   : > { %v452_v11 = vrot.slane %v378_v61, 2  ;;  %v436_v12 = vrot.slane %v379_v0, 6  ;;  %v524_v31 = vmul.f32 0.78698605, %v379_v0  ;;  %v523_v36 = vmul.f32 0.78698605, %v378_v61 }
  0x7e   : > { %v538_v14 = vmul.f32 0.10650698, %v530_v4  ;;  %v399_v15 = vsel %vm395_vm3, %v390_v1, %v394_v6  ;;  %v420_v16 = vsel %vm412_vm4, %v411_v7, %v407_v2  ;;  %v403_v17 = vsel %vm395_vm3, %v394_v6, %v390_v1 }
  0x7f   : > { %v537_v18 = vmul.f32 0.10650698, %v529_v10  ;;  %v460_v19 = vsub.f32 %v379_v0, %v452_v11  ;;  %v416_v20 = vsel %vm412_vm4, %v407_v2, %v411_v7  ;;  %v428_v22 = vadd.f32 %v420_v16, %v399_v15 }
  0x80   : > { %v1552_v21 = vadd.f32 %v538_v14, %v522_v59  ;;  %v444_v23 = vsub.f32 %v378_v61, %v436_v12  ;;  %v427_v26 = vadd.f32 %v416_v20, %v403_v17  ;;  %v1326_v60 = vmov 1  }
  0x81   : > { %v1554_v24 = vadd.f32 %v537_v18, %v521_v8  ;;  %v480_v25 = vrot.slane %v460_v19, %v1499_v56 }
  0x82   : > { %643 = vrot.lane.b32.xlu1 %v1552_v21, %s1321_s18  ;;  %v508_v28 = vrot.slane %v444_v23, %v1475_v27 }
  0x83   : > { %641 = vrot.lane.b32.xlu0 %v1554_v24, %s1321_s18  ;;  %v488_v30 = vsel %vm386_vm7, %v480_v25, 0.0 }
  0x84   : > { %v532_v32 = vadd.f32 %v488_v30, %v428_v22  ;;  %v515_v35 = vsel %vm383_vm2, %v508_v28, 0.0 }
  0x85   : > { %v531_v38 = vadd.f32 %v515_v35, %v427_v26 }
  0x86   : > { %v540_v56 = vmul.f32 0.10650698, %v532_v32 }
  0x87   : > { %v539_v39 = vmul.f32 0.10650698, %v531_v38  ;;  %v1631_v38 = vand.u32 127, %v380_v3 }
  0x88   : > { %v1566_v37 = vadd.f32 %v540_v56, %v524_v31 }
  0x89   : > { %v1568_v40 = vadd.f32 %v539_v39, %v523_v36  ;;  %vm552_vm12 = vcmp.eq.s32.totalorder %v1631_v38, 127  ;;  %vm551_vm13 = vcmp.eq.s32.totalorder %v1631_v38, 0 }
  0x8a   : > { %647 = vrot.lane.b32.xlu1 %v1566_v37, %s1321_s18 }
  0x8b   : > { %645 = vrot.lane.b32.xlu0 %v1568_v40, %s1321_s18 }
  0x8e   : > { %603 = vrot.lane.b32.xlu1 %v1534_v50, %s1323_s21 }
  0x8f   : > { %601 = vrot.lane.b32.xlu0 %v1518_v29, %s1323_s21 }
  0x92   : > { %607 = vrot.lane.b32.xlu1 %v1520_v34, %s1323_s21 }
  0x93   : > { %605 = vrot.lane.b32.xlu0 %v1509_v13, %s1323_s21 }
  0x96   : > { %611 = vrot.lane.b32.xlu1 %v1552_v21, %s1323_s21 }
  0x97   : > { %609 = vrot.lane.b32.xlu0 %v1554_v24, %s1323_s21 }
  0x9a   : > { %615 = vrot.lane.b32.xlu1 %v1566_v37, %s1323_s21 }
  0x9b   : > { %613 = vrot.lane.b32.xlu0 %v1568_v40, %s1323_s21 }
  0x9e   : > { %555 = vrot.lane.b32.xlu1 %v1534_v50, %s1324_s5 }
  0x9f   : > { %553 = vrot.lane.b32.xlu0 %v1518_v29, %s1324_s5 }
  0xa2   : > { %559 = vrot.lane.b32.xlu1 %v1520_v34, %s1324_s5 }
  0xa3   : > { %557 = vrot.lane.b32.xlu0 %v1509_v13, %s1324_s5 }
  0xa6   : > { %563 = vrot.lane.b32.xlu1 %v1552_v21, %s1324_s5 }
  0xa7   : > { %561 = vrot.lane.b32.xlu0 %v1554_v24, %s1324_s5 }
  0xaa   : > { %567 = vrot.lane.b32.xlu1 %v1566_v37, %s1324_s5 }
  0xab   : > { %565 = vrot.lane.b32.xlu0 %v1568_v40, %s1324_s5 }
  0xae   : > { %571 = vrot.lane.b32.xlu1 %v1534_v50, %s1325_s6 }
  0xaf   : > { %569 = vrot.lane.b32.xlu0 %v1518_v29, %s1325_s6 }
  0xb2   : > { %575 = vrot.lane.b32.xlu1 %v1520_v34, %s1325_s6 }
  0xb3   : > { %573 = vrot.lane.b32.xlu0 %v1509_v13, %s1325_s6 }
  0xb7   : > { %577 = vrot.lane.b32.xlu0 %v1554_v24, %s1325_s6 }
  0xe3   : > { %v638_v9 = vpop.permute.xlu1 %637 }
  0xe4   : > { %v659_v44 = vsub.f32 %v1509_v13, %v638_v9 }
  0xe7   : > { %v634_v27 = vpop.permute.xlu0 %633 }
  0xe8   : > { %v657_v33 = vsub.f32 %v1518_v29, %v634_v27  ;;  %v640_v41 = vpop.permute.xlu1 %639 }
  0xe9   : > { %v660_v42 = vsub.f32 %v1520_v34, %v640_v41 }
  0xea   : > { %669 = vperm.xlu0 %1164, %v657_v33  }
  0xeb   : > { %v636_v43 = vpop.permute.xlu0 %635 }
  0xec   : > { %v658_v45 = vsub.f32 %v1534_v50, %v636_v43 }
  0xee   : > { %684 = vperm.xlu0 %1164, %v660_v42   ;;  %674 = vperm.xlu1 %1165, %v658_v45   ;;  %v766_v45 = vmul.f32 0.78698605, %v1534_v50 }
  0xf2   : > { %679 = vperm.xlu1 %1165, %v659_v44  }
  0xf4   : > { %v644_v46 = vpop.permute.xlu1 %643 }
  0xf5   : > { %v662_v47 = vsub.f32 %v1552_v21, %v644_v46  ;;  %v642_v48 = vpop.permute.xlu0 %641 }
  0xf6   : > { %v661_v49 = vsub.f32 %v1554_v24, %v642_v48 }
  0xf7   : > { %694 = vperm.xlu0 %1164, %v662_v47   ;;  %v765_v47 = vmul.f32 0.78698605, %v1518_v29 }
  0xf8   : > { %689 = vperm.xlu1 %1165, %v661_v49  }
  0xfc   : > { %v648_v51 = vpop.permute.xlu1 %647 }
  0xfd   : > { %v664_v52 = vsub.f32 %v1566_v37, %v648_v51  ;;  %v646_v53 = vpop.permute.xlu0 %645 }
  0xfe   : > { %v663_v54 = vsub.f32 %v1568_v40, %v646_v53 }
  0xff   : > { %704 = vperm.xlu0 %1164, %v664_v52  }
 0x100   : > { %v604_v55 = vpop.permute.xlu1 %603  ;;  %699 = vperm.xlu1 %1165, %v663_v54  }
 0x101   : > { %v602_v57 = vpop.permute.xlu0 %601  ;;  %v626_v58 = vsub.f32 %v1534_v50, %v604_v55 }
 0x102   : > { %v625_v59 = vsub.f32 %v1518_v29, %v602_v57 }
 0x103   : > { %1167 = vset.pattern.permute.xlu0 %v1326_v60 }
 0x104   : > { %724 = vperm.xlu0 %1167, %v626_v58   ;;  %1166 = vset.pattern.permute.xlu1 %v1326_v60  ;;  %v608_v61 = vpop.permute.xlu1 %607  ;;  %v767_v58 = vmul.f32 0.78698605, %v1509_v13 }
 0x105   : > { %v606_v62 = vpop.permute.xlu0 %605  ;;  %719 = vperm.xlu1 %1166, %v625_v59   ;;  %v628_v2 = vsub.f32 %v1520_v34, %v608_v61 }
 0x106   : > { %v627_v63 = vsub.f32 %v1509_v13, %v606_v62  ;;  %v769_v13 = vmul.f32 0.78698605, %v1554_v24 }
 0x108   : > { %v612_v0 = vpop.permute.xlu1 %611 }
 0x109   : > { %v610_v1 = vpop.permute.xlu0 %609  ;;  %729 = vperm.xlu1 %1166, %v627_v63   ;;  %v630_v6 = vsub.f32 %v1552_v21, %v612_v0 }
 0x10a   : > { %v629_v4 = vsub.f32 %v1554_v24, %v610_v1 }
 0x10c   : > { %739 = vperm.xlu0 %1167, %v629_v4   ;;  %v616_v8 = vpop.permute.xlu1 %615 }
 0x10d   : > { %v614_v5 = vpop.permute.xlu0 %613  ;;  %734 = vperm.xlu1 %1166, %v628_v2   ;;  %v632_v10 = vsub.f32 %v1566_v37, %v616_v8 }
 0x10e   : > { %v631_v7 = vsub.f32 %v1568_v40, %v614_v5 }
 0x110   : > { %749 = vperm.xlu0 %1167, %v631_v7   ;;  %v556_v14 = vpop.permute.xlu1 %555  ;;  %v768_v7 = vmul.f32 0.78698605, %v1520_v34 }
 0x111   : > { %744 = vperm.xlu1 %1166, %v630_v6   ;;  %v554_v11 = vpop.permute.xlu0 %553 }
 0x114   : > { %581 = vrot.lane.b32.xlu0 %v1568_v40, %s1325_s6  ;;  %v560_v16 = vpop.permute.xlu1 %559 }
 0x115   : > { %754 = vperm.xlu1 %1166, %v632_v10   ;;  %v558_v12 = vpop.permute.xlu0 %557 }
 0x118   : > { %v1624_v18 = vpop.permute.xlu1 %563 }
 0x119   : > { %579 = vrot.lane.b32.xlu1 %v1552_v21, %s1325_s6  ;;  %v562_v15 = vpop.permute.xlu0 %561 }
 0x11c   : > { %v1626_v20 = vpop.permute.xlu1 %567 }
 0x11d   : > { %583 = vrot.lane.b32.xlu1 %v1566_v37, %s1325_s6  ;;  %v1622_v17 = vpop.permute.xlu0 %565 }
 0x120   : > { %v572_v23 = vpop.permute.xlu1 %571 }
 0x121   : > { %v570_v19 = vpop.permute.xlu0 %569  ;;  %v586_v9 = vadd.f32 %v572_v23, %v556_v14 }
 0x122   : > { %v585_v41 = vadd.f32 %v570_v19, %v554_v11 }
 0x124   : > { %v576_v26 = vpop.permute.xlu1 %575 }
 0x125   : > { %v574_v22 = vpop.permute.xlu0 %573  ;;  %v588_v62 = vadd.f32 %v576_v26, %v560_v16 }
 0x126   : > { %v587_v51 = vadd.f32 %v574_v22, %v558_v12 }
 0x129   : > { %v578_v25 = vpop.permute.xlu0 %577 }
 0x12a   : > { %v589_v60 = vadd.f32 %v578_v25, %v562_v15  ;;  %v771_v25 = vmul.f32 0.78698605, %v1568_v40 }
 0x169   : > { %v670_v28 = vpop.permute.xlu0 %669 }
 0x16a   : > { %v707_v42 = vsel %vm552_vm12, %v670_v28, 0.0 }
 0x16d   : > { %v675_v30 = vpop.permute.xlu1 %674  ;;  %v685_v31 = vpop.permute.xlu0 %684 }
 0x16e   : > { %v708_v27 = vsel %vm552_vm12, %v675_v30, 0.0  ;;  %v710_v63 = vsel %vm552_vm12, %v685_v31, 0.0 }
 0x171   : > { %v680_v32 = vpop.permute.xlu1 %679 }
 0x172   : > { %v709_v52 = vsel %vm552_vm12, %v680_v32, 0.0 }
 0x176   : > { %v1628_v35 = vpop.permute.xlu0 %694 }
 0x177   : > { %v690_v36 = vpop.permute.xlu1 %689  ;;  %v712_v31 = vsel %vm552_vm12, %v1628_v35, 0.0 }
 0x178   : > { %v711_v29 = vsel %vm552_vm12, %v690_v36, 0.0 }
 0x17e   : > { %v1633_v56 = vpop.permute.xlu0 %704 }
 0x17f   : > { %v700_v39 = vpop.permute.xlu1 %699 }
 0x180   : > { %v713_v24 = vsel %vm552_vm12, %v700_v39, 0.0 }
 0x183   : > { %v725_v33 = vpop.permute.xlu0 %724 }
 0x184   : > { %v758_v3 = vsel %vm551_vm13, %v725_v33, %v708_v27  ;;  %v720_v43 = vpop.permute.xlu1 %719 }
 0x185   : > { %v774_v44 = vadd.f32 %v758_v3, %v586_v9  ;;  %v757_v46 = vsel %vm551_vm13, %v720_v43, %v707_v42 }
 0x186   : > { %v773_v48 = vadd.f32 %v757_v46, %v585_v41  ;;  %v714_v41 = vsel %vm552_vm12, %v1633_v56, 0.0 }
 0x187   : > { %v782_v49 = vmul.f32 0.10650698, %v774_v44 }
 0x188   : > { %v781_v53 = vmul.f32 0.10650698, %v773_v48  ;;  %v730_v54 = vpop.permute.xlu1 %729 }
 0x189   : > { %v1649_v55 = vadd.f32 %v782_v49, %v766_v45  ;;  %v759_v57 = vsel %vm551_vm13, %v730_v54, %v709_v52 }
 0x18a   : > { %v789_v50 = vadd.f32 %v781_v53, %v765_v47  ;;  %v775_v59 = vadd.f32 %v759_v57, %v587_v51 }
 0x18b   : > { %801 = vst [vmem:[#allocation2 + $0x8] sm:$0xff] %v1649_v55  ;;  %v740_v61 = vpop.permute.xlu0 %739 }
 0x18c   : > { %800 = vst [vmem:[#allocation2] sm:$0xff] %v789_v50  ;;  %v761_v0 = vsel %vm551_vm13, %v740_v61, %v711_v29  ;;  %v783_v1 = vmul.f32 0.10650698, %v775_v59  ;;  %v735_v2 = vpop.permute.xlu1 %734 }
 0x18d   : > { %v777_v4 = vadd.f32 %v761_v0, %v589_v60  ;;  %v760_v5 = vsel %vm551_vm13, %v735_v2, %v710_v63 }
 0x18e   : > { %v791_v6 = vadd.f32 %v783_v1, %v767_v58  ;;  %v776_v8 = vadd.f32 %v760_v5, %v588_v62 }
 0x18f   : > { %v785_v10 = vmul.f32 0.10650698, %v777_v4  ;;  %v750_v11 = vpop.permute.xlu0 %749 }
 0x190   : > { %802 = vst [vmem:[#allocation2 + $0x10] sm:$0xff] %v791_v6  ;;  %v784_v12 = vmul.f32 0.10650698, %v776_v8  ;;  %v745_v14 = vpop.permute.xlu1 %744  ;;  %v763_v34 = vsel %vm551_vm13, %v750_v11, %v713_v24 }
 0x191   : > { %v793_v15 = vadd.f32 %v785_v10, %v769_v13  ;;  %v762_v39 = vsel %vm551_vm13, %v745_v14, %v712_v31 }
 0x192   : > { %v792_v16 = vadd.f32 %v784_v12, %v768_v7 }
 0x193   : > { %804 = vst [vmem:[#allocation2 + $0x20] sm:$0xff] %v793_v15  ;;  %v582_v19 = vpop.permute.xlu0 %581  ;;  %v808_v33 = vmin.f32 %v789_v50, %v793_v15  ;;  %v814_v46 = vmax.f32 %v789_v50, %v793_v15 }
 0x194   : > { %803 = vst [vmem:[#allocation2 + $0x18] sm:$0xff] %v792_v16  ;;  %v591_v22 = vadd.f32 %v582_v19, %v1622_v17  ;;  %v755_v23 = vpop.permute.xlu1 %754  ;;  %v770_v17 = vmul.f32 0.78698605, %v1552_v21  ;;  %v772_v21 = vmul.f32 0.78698605, %v1566_v37 }
 0x196   : > { %v779_v26 = vadd.f32 %v763_v34, %v591_v22 }
 0x198   : > { %v787_v28 = vmul.f32 0.10650698, %v779_v26  ;;  %v580_v30 = vpop.permute.xlu1 %579 }
 0x199   : > { %v590_v32 = vadd.f32 %v580_v30, %v1624_v18  ;;  %v764_v18 = vsel %vm551_vm13, %v755_v23, %v714_v41 }
 0x19a   : > { %v795_v36 = vadd.f32 %v787_v28, %v771_v25 }
 0x19b   : > { %v778_v9 = vadd.f32 %v762_v39, %v590_v32 }
 0x19c   : > { %806 = vst [vmem:[#allocation2 + $0x30] sm:$0xff] %v795_v36  ;;  %v584_v27 = vpop.permute.xlu1 %583  ;;  %v809_v40 = vmin.f32 %v791_v6, %v795_v36  ;;  %v815_v43 = vmax.f32 %v791_v6, %v795_v36 }
 0x19d   : > { %v786_v42 = vmul.f32 0.10650698, %v778_v9  ;;  %v592_v35 = vadd.f32 %v584_v27, %v1626_v20 }
 0x19e   : > { %v810_v3 = vmin.f32 %v808_v33, %v809_v40  ;;  %v816_v48 = vmax.f32 %v814_v46, %v815_v43 }
 0x19f   : > { %v794_v45 = vadd.f32 %v786_v42, %v770_v17  ;;  %v780_v44 = vadd.f32 %v764_v18, %v592_v35 }
 0x1a0   : > { %837 = vmin.xlane.f32.xlu0 %v810_v3 }
 0x1a1   : > { %805 = vst [vmem:[#allocation2 + $0x28] sm:$0xff] %v794_v45  ;;  %v788_v47 = vmul.f32 0.10650698, %v780_v44  ;;  %v817_v56 = vmax.f32 %v1649_v55, %v794_v45  ;;  %v811_v38 = vmin.f32 %v1649_v55, %v794_v45 }
 0x1a3   : > { %v796_v49 = vadd.f32 %v788_v47, %v772_v21 }
 0x1a4   : > { %850 = vmax.xlane.f32.xlu0 %v816_v48 }
 0x1a5   : > { %807 = vst [vmem:[#allocation2 + $0x38] sm:$0xff] %v796_v49  ;;  %v818_v20 = vmax.f32 %v792_v16, %v796_v49  ;;  %v812_v51 = vmin.f32 %v792_v16, %v796_v49 }
 0x1a7   : > { %v819_v52 = vmax.f32 %v817_v56, %v818_v20  ;;  %v813_v53 = vmin.f32 %v811_v38, %v812_v51 }
 0x1a9   : > { %852 = vmax.xlane.f32.xlu0 %v819_v52  ;;  %839 = vmin.xlane.f32.xlu1 %v813_v53 }
 0x22d   : > { %v838_v37 = vpop.xlane.xlu0 %837 }
 0x231   : > { %v851_v54 = vpop.xlane.xlu0 %850 }
 0x236   : > { %v853_v57 = vpop.xlane.xlu0 %852  ;;  %v840_v50 = vpop.xlane.xlu1 %839 }
 0x237   : > { %v854_v58 = vmax.f32 %v851_v54, %v853_v57  ;;  %v841_v59 = vmin.f32 %v838_v37, %v840_v50 }
 0x239   : > { %v855_v60 = vrot.slane %v854_v58, 4  ;;  %v842_v29 = vrot.slane %v841_v59, 4 }
 0x23b   : > { %v856_v61 = vmax.f32 %v854_v58, %v855_v60  ;;  %v843_v62 = vmin.f32 %v841_v59, %v842_v29 }
 0x23d   : > { %v857_v63 = vrot.slane %v856_v61, 2  ;;  %v844_v0 = vrot.slane %v843_v62, 2 }
 0x23f   : > { %v858_v1 = vmax.f32 %v856_v61, %v857_v63  ;;  %v845_v2 = vmin.f32 %v843_v62, %v844_v0 }
 0x241   : > { %v859_v55 = vrot.slane %v858_v1, 1  ;;  %v846_v13 = vrot.slane %v845_v2, 1 }
 0x243   : > { %v860_v4 = vmax.f32 %v858_v1, %v859_v55  ;;  %v847_v5 = vmin.f32 %v845_v2, %v846_v13 }
 0x245   : > { %v861_v6 = vsub.f32 %v860_v4, %v847_v5  ;;  %v867_v11 = vsub.f32 0.0, %v847_v5 }
 0x247   : > { %v862_v7 = vmax.f32 %v861_v6, 1e-06 }
 0x249   : > { %1168 = vrcp.f32 %v862_v7 }
 0x253   : > { %v1169_v8 = vpop.eup %1168 }
 0x254   : > { %v864_v10 = vmul.f32 2.0, %v1169_v8 }
 0x256   : > { %866 = vst.msk [vmem:[#allocation5] sm:$0x1] %vm865_vm14, %v864_v10  ;;  %v868_v12 = vmul.f32 %v867_v11, %v864_v10 }
 0x258   : > { %v1076_v14 = vadd.f32 -1.0, %v868_v12 }
 0x25a   : > { %870 = vst.msk [vmem:[#allocation5 + $0x1] sm:$0x1] %vm865_vm14, %v1076_v14 }
 0x25b PF: > { %p1077_p3 = scmp.ne.s32.totalorder %s1306_s12, 1 }
 0x25c   : > { %v878_v19 = vld [vmem:[#allocation2] sm:$0xff] (!%p1077_p3)  ;;  %v879_v24 = vld [vmem:[#allocation2 + $0x8] sm:$0xff] (!%p1077_p3)  ;;  %v880_v22 = vld [vmem:[#allocation2 + $0x10] sm:$0xff] (!%p1077_p3) }
 0x25d   : > { %874 = sbr.rel (%p1077_p3) target bundleno = 667 (0x29b), region = 60  ;;  %v886_v15 = vld [vmem:[#allocation5] sm:$0x1] (!%p1077_p3)  ;;  %v881_v23 = vld [vmem:[#allocation2 + $0x18] sm:$0xff] (!%p1077_p3)  ;;  %v883_v25 = vld [vmem:[#allocation2 + $0x28] sm:$0xff] (!%p1077_p3) }
 0x25e   : > { %1082 = vpush (!%p1077_p3), %v886_v15  ;;  %v882_v34 = vld [vmem:[#allocation2 + $0x20] sm:$0xff] (!%p1077_p3)  ;;  %v884_v26 = vld [vmem:[#allocation2 + $0x30] sm:$0xff] (!%p1077_p3)  ;;  %v885_v28 = vld [vmem:[#allocation2 + $0x38] sm:$0xff] (!%p1077_p3) }
 0x261   : > { %v899_v16 = vld [vmem:[#allocation5 + $0x1] sm:$0x1] (!%p1077_p3) }
 0x262   : > { %1084 = vpush (!%p1077_p3), %v899_v16 }
 0x28f   : > { %s1083_s9 = spop %1082 }
 0x290   : > { %v889_v30 = vstv %s1083_s9 }
 0x291   : > { %v891_v31 = vmul.f32 %v889_v30, %v878_v19  ;;  %v892_v32 = vmul.f32 %v889_v30, %v879_v24  ;;  %v893_v36 = vmul.f32 %v889_v30, %v880_v22  ;;  %v894_v39 = vmul.f32 %v889_v30, %v881_v23 }
 0x292   : > { %v895_v17 = vmul.f32 %v889_v30, %v882_v34  ;;  %v896_v9 = vmul.f32 %v889_v30, %v883_v25  ;;  %v897_v27 = vmul.f32 %v889_v30, %v884_v26  ;;  %v898_v33 = vmul.f32 %v889_v30, %v885_v28 }
 0x293   : > { %s1085_s4 = spop %1084 }
 0x294   : > { %v902_v40 = vstv %s1085_s4 }
 0x295   : > { %v904_v41 = vadd.f32 %v902_v40, %v891_v31  ;;  %v905_v42 = vadd.f32 %v902_v40, %v892_v32  ;;  %v906_v35 = vadd.f32 %v902_v40, %v893_v36  ;;  %v907_v18 = vadd.f32 %v902_v40, %v894_v39 }
 0x296   : > { %v908_v3 = vadd.f32 %v902_v40, %v895_v17  ;;  %v909_v43 = vadd.f32 %v902_v40, %v896_v9  ;;  %v910_v45 = vadd.f32 %v902_v40, %v897_v27  ;;  %v911_v21 = vadd.f32 %v902_v40, %v898_v33 }
 0x297   : > { %912 = vst [vmem:[#allocation12] sm:$0xff] %v904_v41  ;;  %913 = vst [vmem:[#allocation12 + $0x8] sm:$0xff] %v905_v42 }
 0x298   : > { %914 = vst [vmem:[#allocation12 + $0x10] sm:$0xff] %v906_v35  ;;  %915 = vst [vmem:[#allocation12 + $0x18] sm:$0xff] %v907_v18 }
 0x299   : > { %916 = vst [vmem:[#allocation12 + $0x20] sm:$0xff] %v908_v3  ;;  %917 = vst [vmem:[#allocation12 + $0x28] sm:$0xff] %v909_v43 }
 0x29a   : > { %918 = vst [vmem:[#allocation12 + $0x30] sm:$0xff] %v910_v45  ;;  %919 = vst [vmem:[#allocation12 + $0x38] sm:$0xff] %v911_v21 }
 0x29b PF: > { %p1123_p9 = scmp.eq.s32.totalorder %s1366_s15, 1  ;;  %s1327_s12 = smov [#allocation12]  }
 0x29c   : > { %s936_s7 = sshll.u32 %s1327_s12, 4  ;;  %s937_s7 = int_to_ptr.vmem [resolvable:$true] %s936_s7 }
 0x29d   : > { %s1254_s8 = scalar_lea.vmem %s937_s7, 1024  ;;  %s1260_s11 = scalar_lea.vmem %s937_s7, 2048 }
 0x29e   : > { %p1255_p10 = scmp.ne.s32.totalorder %s937_s7, %s1254_s8  ;;  %p1261_p13 = scmp.lt.s32.totalorder %s937_s7, %s937_s7 }
 0x29f   : > { %p1262_p1 = scmp.lt.s32.totalorder %s1260_s11, %s1254_s8 }
 0x2a0   : > { %p1256_p11 = pnand %p1255_p10, %p1123_p9 }
 0x2a1   : > { %p1263_p2 = por %p1262_p1, %p1261_p13 }
 0x2a2   : > { %p1257_p12 = pneg %p1256_p11 }
 0x2a4   : > { %p1264_p5 = pnand %p1263_p2, %p1257_p12 }
 0x2a6   : > { %1267 = shalt.err (!%p1264_p5)
}
 0x2a7   : > { %s1268_s23 = scalar_lea.hbm %s1723_s3, 1024 }
 0x2a8   : > { %p1269_p7 = scmp.ne.s32.totalorder %s1723_s3, %s1268_s23  ;;  %p1274_p6 = scmp.lt.u32.totalorder %s1268_s23, %s1723_s3 }
 0x2aa   : > { %p1270_p4 = pnand %p1269_p7, %p1123_p9 }
 0x2ac   : > { %p1271_p0 = pneg %p1270_p4 }
 0x2ae   : > { %p1276_p8 = pnand %p1274_p6, %p1271_p0 }
 0x2b0   : > { %1279 = shalt.err (!%p1276_p8)
}
 0x2b1   : > { %s1328_s26 = smov 128   ;;  %s1329_s28 = smov 8  }
 0x2b2   : > { %1099 = dma.vmem_to_hbm [thread:$0]  (%p1123_p9), %s937_s7, 1024, %s1723_s3, [#allocation8], %s1328_s26, %s1328_s26, %s1329_s28  }
 0x2b3 PF: > { %p1125_p3 = scmp.eq.s32.totalorder %s1065_s16, 1  ;;  %p1729_p10 = scmp.ge.s32.totalorder %s1314_s14, 2 }
 0x2b5   : > { %p1113_p11 = pnand %p1125_p3, %p1729_p10 }
 0x2b7   : > { %1301 = dma.done.wait (!%p1113_p11), [#allocation8], 1024  }
 0x2b8   : > { %1303 = vsyncadd (!%p1113_p11), [#allocation8], 4294966272  ;;  %s22_s14 = sadd.s32 1, %s1314_s14   ;;  %s1730_s12 = smov %s1310_s13 }
 0x2b9   : > { %p19_p12 = scmp.ge.s32.totalorder %s22_s14, 4   ;;  %s1731_s13 = smov %s1733_s10 }
 0x2bb   :  { %21 = sbr.rel (!%p19_p12) target bundleno = 7 (0x7), region = 119 }
 0x2c2   :  { %957 = vsyncpa [#allocation7], 1 }
 0x2c3   :  { %959 = vsyncpa [#allocation7 + $0x1], 1 }
 0x2c4   :  { %960 = vsyncpa [#allocation10], 1 }
 0x2c5   :  { %962 = vsyncpa [#allocation10 + $0x1], 1 }
 0x2c6   :  { %963 = vsyncpa [#allocation8], 1 }
 0x2c7   :  { %965 = vsyncpa [#allocation8 + $0x1], 1 }

</bundles_post_ra>
